<compile_context>
chip_gen: v6e
topology: v6e:2x2x1
jax: 0.10.0
libtpu: 0.0.40
codegen_flags: <defaults>
</compile_context>

<pallas_src>
import jax
import jax.numpy as jnp
from jax.experimental import pallas as pl
from jax.experimental.pallas import tpu as pltpu


_NUM_LAYERS = 6  # encoder1, encoder2, bottleneck, decoder2, decoder1, output_layer


def _round_up(n, m):
    return ((n + m - 1) // m) * m


def _mlp_kernel(x_ref, w_ref, b_ref, out_ref, bott_ref):
    """Whole forward pass for one (tb, F) batch tile.

    x_ref    : (tb, F)    bf16  zero-padded input features
    w_ref    : (L, F, F)  bf16  folded + zero-padded weights, (in, out) layout
    b_ref    : (8, F)     f32   folded + zero-padded biases (row l = layer l)
    out_ref  : (tb, F)    f32   reconstruction (padded)
    bott_ref : (tb, F)    f32   bottleneck activations (padded)
    """

    def layer(h, l, relu=True):
        # Static slices of the packed slabs -> zero-cost views of VMEM.
        z = jnp.dot(h, w_ref[l], preferred_element_type=jnp.float32) + b_ref[l:l + 1, :]
        return jnp.maximum(z, 0.0) if relu else z

    h = x_ref[...]                                   # bf16
    h = layer(h, 0).astype(jnp.bfloat16)             # encoder1
    h = layer(h, 1).astype(jnp.bfloat16)             # encoder2
    bott = layer(h, 2)                               # bottleneck (f32)
    bott_ref[...] = bott
    h = bott.astype(jnp.bfloat16)
    h = layer(h, 3).astype(jnp.bfloat16)             # decoder2
    h = layer(h, 4).astype(jnp.bfloat16)             # decoder1
    out_ref[...] = layer(h, 5, relu=False)           # output_layer (no ReLU)


def _choose_batch_tile(b_pad):
    """Largest multiple of 8 (<= 1024 rows) that divides the padded batch."""
    for cand in (1024, 512, 256, 128, 64, 32, 16, 8):
        if cand <= b_pad and b_pad % cand == 0:
            return cand
    return b_pad


def stimulus_prediction_forward(x, folded_params, *, batch_tile=None):
    """Runs the full MLP in one Pallas kernel, tiled over the (padded) batch.

    Returns (reconstruction (B, out_size), bottleneck_output (B, bottleneck)).
    """
    w_slab, b_slab, dims = folded_params
    input_size = dims[0]
    bottleneck_size = dims[3]
    out_size = dims[-1]
    F = w_slab.shape[-1]

    B = x.shape[0]
    B_pad = _round_up(B, 8)
    tb = batch_tile or _choose_batch_tile(B_pad)
    assert tb % 8 == 0 and B_pad % tb == 0, (tb, B_pad)

    # Zero-pad batch to a multiple of 8 and features to F lanes; cast to bf16.
    xp = jnp.zeros((B_pad, F), jnp.bfloat16)
    xp = xp.at[:B, :input_size].set(x.astype(jnp.bfloat16))

    batch_spec = pl.BlockSpec((tb, F), lambda i: (i, 0))
    # Parameter slabs: constant index_map, fetched once and kept resident.
    w_spec = pl.BlockSpec(w_slab.shape, lambda i: (0, 0, 0))
    b_spec = pl.BlockSpec(b_slab.shape, lambda i: (0, 0))

    out_p, bott_p = pl.pallas_call(
        _mlp_kernel,
        out_shape=[
            jax.ShapeDtypeStruct((B_pad, F), jnp.float32),
            jax.ShapeDtypeStruct((B_pad, F), jnp.float32),
        ],
        grid_spec=pltpu.PrefetchScalarGridSpec(
            num_scalar_prefetch=0,
            grid=(B_pad // tb,),
            in_specs=[batch_spec, w_spec, b_spec],
            out_specs=[batch_spec, batch_spec],
        ),
        compiler_params=pltpu.CompilerParams(
            dimension_semantics=("parallel",),
        ),
    )(xp, w_slab, b_slab)

    # Slice off lane / batch padding.
    return out_p[:B, :out_size], bott_p[:B, :bottleneck_size]


def _init_folded_params(key, input_size, hidden1, hidden2, bottleneck, out_size,
                        lane_pad=128):
    """Synthetic deterministic parameters, BN-folded, padded, packed into slabs.

    Returns:
      folded_params = (w_slab bf16 (L,F,F), b_slab f32 (8,F), dims)
      per_layer     = list of unpadded folded (w f32 (din,dout), b f32 (dout,))
                      for the pure-JAX reference.
    """
    eps = 1e-5
    dims = (input_size, hidden1, hidden2, bottleneck, hidden2, hidden1, out_size)
    F = max(_round_up(d, lane_pad) for d in dims)

    w_slab = jnp.zeros((_NUM_LAYERS, F, F), jnp.float32)
    b_slab = jnp.zeros((8, F), jnp.float32)   # rows padded 6 -> 8 (sublane align)
    per_layer = []

    for l in range(_NUM_LAYERS):
        din, dout = dims[l], dims[l + 1]
        key, kw, kb = jax.random.split(key, 3)
        w = 0.05 * jax.random.normal(kw, (din, dout), jnp.float32)
        b = 0.05 * jax.random.normal(kb, (dout,), jnp.float32)
        if l < _NUM_LAYERS - 1:  # all hidden blocks have BatchNorm1d (eval mode)
            key, kg, kbe, km, kv = jax.random.split(key, 5)
            gamma = 1.0 + 0.1 * jax.random.normal(kg, (dout,), jnp.float32)
            beta = 0.1 * jax.random.normal(kbe, (dout,), jnp.float32)
            run_mean = 0.1 * jax.random.normal(km, (dout,), jnp.float32)
            run_var = 1.0 + 0.1 * jax.random.uniform(kv, (dout,), jnp.float32)
            scale = gamma / jnp.sqrt(run_var + eps)
            w = w * scale[None, :]
            b = b * scale + (beta - run_mean * scale)
        per_layer.append((w, b))
        w_slab = w_slab.at[l, :din, :dout].set(w)
        b_slab = b_slab.at[l, :dout].set(b)

    return (w_slab.astype(jnp.bfloat16), b_slab, dims), per_layer


def _reference_forward(x, per_layer):
    """Pure-JAX reference mirroring the kernel math (bf16 operands, f32 accum)."""
    h = x
    bott = None
    for l, (w, b) in enumerate(per_layer):
        z = jnp.dot(h.astype(jnp.bfloat16), w.astype(jnp.bfloat16),
                    preferred_element_type=jnp.float32) + b[None, :]
        if l < _NUM_LAYERS - 1:
            z = jnp.maximum(z, 0.0)
        if l == 2:
            bott = z
        h = z
    return h, bott


if __name__ == "__main__":
    # Small shapes consistent with the module: (batch, input_size) features.
    batch = 16
    input_size = 32
    hidden1 = 64
    hidden2 = 32
    bottleneck = 18
    output_size = input_size  # output_size = output_size or input_size

    key = jax.random.PRNGKey(0)
    key, kx = jax.random.split(key)
    x = jax.random.normal(kx, (batch, input_size), jnp.float32)

    folded_params, per_layer = _init_folded_params(
        key, input_size, hidden1, hidden2, bottleneck, output_size)

    # batch_tile=8 exercises the multi-step "parallel" batch grid.
    out, bott = stimulus_prediction_forward(x, folded_params, batch_tile=8)
    out = jax.block_until_ready(out)
    bott = jax.block_until_ready(bott)

    ref_out, ref_bott = _reference_forward(x, per_layer)

    assert out.shape == (batch, output_size)
    assert bott.shape == (batch, bottleneck)
    assert jnp.allclose(out, ref_out, atol=1e-2, rtol=1e-2), \
        float(jnp.max(jnp.abs(out - ref_out)))
    assert jnp.allclose(bott, ref_bott, atol=1e-2, rtol=1e-2), \
        float(jnp.max(jnp.abs(bott - ref_bott)))

    print("KERNEL_OK")
</pallas_src>

<mosaic_0001>
module attributes {stable_mosaic.version = 11 : i64} {
  func.func @_mlp_kernel(%arg0: i32, %arg1: memref<8x128xbf16, #tpu.memory_space<vmem>>, %arg2: memref<6x128x128xbf16, #tpu.memory_space<vmem>>, %arg3: memref<8x128xf32, #tpu.memory_space<vmem>>, %arg4: memref<8x128xf32, #tpu.memory_space<vmem>>, %arg5: memref<8x128xf32, #tpu.memory_space<vmem>>) attributes {dimension_semantics = [#tpu.dimension_semantics<parallel>], iteration_bounds = array<i64: 2>, scalar_prefetch = 0 : i64, scratch_operands = 0 : i64, tpu.core_type = #tpu.core_type<tc>, window_params = [{transform_indices = @transform_0, window_bounds = array<i64: 8, 128>}, {pipeline_mode = #tpu.pipeline_mode<synchronous>, transform_indices = @transform_1, window_bounds = array<i64: 6, 128, 128>}, {pipeline_mode = #tpu.pipeline_mode<synchronous>, transform_indices = @transform_2, window_bounds = array<i64: 8, 128>}, {transform_indices = @transform_3, window_bounds = array<i64: 8, 128>}, {transform_indices = @transform_4, window_bounds = array<i64: 8, 128>}]} {
    %c0 = arith.constant 0 : index
    %c0_0 = arith.constant 0 : index
    %0 = vector.load %arg1[%c0, %c0_0] : memref<8x128xbf16, #tpu.memory_space<vmem>>, vector<8x128xbf16>
    %c0_1 = arith.constant 0 : index
    %c0_2 = arith.constant 0 : index
    %c0_3 = arith.constant 0 : index
    %1 = vector.load %arg2[%c0_1, %c0_2, %c0_3] : memref<6x128x128xbf16, #tpu.memory_space<vmem>>, vector<1x128x128xbf16>
    %2 = vector.shape_cast %1 : vector<1x128x128xbf16> to vector<128x128xbf16>
    %cst = arith.constant dense<0.000000e+00> : vector<8x128xf32>
    %3 = tpu.matmul %0, %2, %cst {dimension_numbers = #tpu.dot_dimension_numbers<[1], [0], [0], [1], [0, 0, 1, 1], [], []>} : vector<8x128xbf16>, vector<128x128xbf16>, vector<8x128xf32> -> vector<8x128xf32>
    %c0_4 = arith.constant 0 : index
    %c0_5 = arith.constant 0 : index
    %4 = vector.load %arg3[%c0_4, %c0_5] : memref<8x128xf32, #tpu.memory_space<vmem>>, vector<1x128xf32>
    %5 = vector.broadcast %4 : vector<1x128xf32> to vector<8x128xf32>
    %6 = arith.addf %3, %5 : vector<8x128xf32>
    %cst_6 = arith.constant 0.000000e+00 : f32
    %7 = vector.broadcast %cst_6 : f32 to vector<8x128xf32>
    %8 = arith.maximumf %6, %7 : vector<8x128xf32>
    %9 = arith.truncf %8 : vector<8x128xf32> to vector<8x128xbf16>
    %c1 = arith.constant 1 : index
    %c0_7 = arith.constant 0 : index
    %c0_8 = arith.constant 0 : index
    %10 = vector.load %arg2[%c1, %c0_7, %c0_8] : memref<6x128x128xbf16, #tpu.memory_space<vmem>>, vector<1x128x128xbf16>
    %11 = vector.shape_cast %10 : vector<1x128x128xbf16> to vector<128x128xbf16>
    %cst_9 = arith.constant dense<0.000000e+00> : vector<8x128xf32>
    %12 = tpu.matmul %9, %11, %cst_9 {dimension_numbers = #tpu.dot_dimension_numbers<[1], [0], [0], [1], [0, 0, 1, 1], [], []>} : vector<8x128xbf16>, vector<128x128xbf16>, vector<8x128xf32> -> vector<8x128xf32>
    %c1_10 = arith.constant 1 : index
    %c0_11 = arith.constant 0 : index
    %13 = vector.load %arg3[%c1_10, %c0_11] : memref<8x128xf32, #tpu.memory_space<vmem>>, vector<1x128xf32>
    %14 = vector.broadcast %13 : vector<1x128xf32> to vector<8x128xf32>
    %15 = arith.addf %12, %14 : vector<8x128xf32>
    %cst_12 = arith.constant 0.000000e+00 : f32
    %16 = vector.broadcast %cst_12 : f32 to vector<8x128xf32>
    %17 = arith.maximumf %15, %16 : vector<8x128xf32>
    %18 = arith.truncf %17 : vector<8x128xf32> to vector<8x128xbf16>
    %c2 = arith.constant 2 : index
    %c0_13 = arith.constant 0 : index
    %c0_14 = arith.constant 0 : index
    %19 = vector.load %arg2[%c2, %c0_13, %c0_14] : memref<6x128x128xbf16, #tpu.memory_space<vmem>>, vector<1x128x128xbf16>
    %20 = vector.shape_cast %19 : vector<1x128x128xbf16> to vector<128x128xbf16>
    %cst_15 = arith.constant dense<0.000000e+00> : vector<8x128xf32>
    %21 = tpu.matmul %18, %20, %cst_15 {dimension_numbers = #tpu.dot_dimension_numbers<[1], [0], [0], [1], [0, 0, 1, 1], [], []>} : vector<8x128xbf16>, vector<128x128xbf16>, vector<8x128xf32> -> vector<8x128xf32>
    %c2_16 = arith.constant 2 : index
    %c0_17 = arith.constant 0 : index
    %22 = vector.load %arg3[%c2_16, %c0_17] : memref<8x128xf32, #tpu.memory_space<vmem>>, vector<1x128xf32>
    %23 = vector.broadcast %22 : vector<1x128xf32> to vector<8x128xf32>
    %24 = arith.addf %21, %23 : vector<8x128xf32>
    %cst_18 = arith.constant 0.000000e+00 : f32
    %25 = vector.broadcast %cst_18 : f32 to vector<8x128xf32>
    %26 = arith.maximumf %24, %25 : vector<8x128xf32>
    %c0_19 = arith.constant 0 : index
    %c0_20 = arith.constant 0 : index
    %27 = vector.load %arg5[%c0_19, %c0_20] : memref<8x128xf32, #tpu.memory_space<vmem>>, vector<8x128xf32>
    tpu.vector_store %arg5[%c0_19, %c0_20], %26 {strides = array<i32>} : memref<8x128xf32, #tpu.memory_space<vmem>>, vector<8x128xf32>,
    %28 = arith.truncf %26 : vector<8x128xf32> to vector<8x128xbf16>
    %c3 = arith.constant 3 : index
    %c0_21 = arith.constant 0 : index
    %c0_22 = arith.constant 0 : index
    %29 = vector.load %arg2[%c3, %c0_21, %c0_22] : memref<6x128x128xbf16, #tpu.memory_space<vmem>>, vector<1x128x128xbf16>
    %30 = vector.shape_cast %29 : vector<1x128x128xbf16> to vector<128x128xbf16>
    %cst_23 = arith.constant dense<0.000000e+00> : vector<8x128xf32>
    %31 = tpu.matmul %28, %30, %cst_23 {dimension_numbers = #tpu.dot_dimension_numbers<[1], [0], [0], [1], [0, 0, 1, 1], [], []>} : vector<8x128xbf16>, vector<128x128xbf16>, vector<8x128xf32> -> vector<8x128xf32>
    %c3_24 = arith.constant 3 : index
    %c0_25 = arith.constant 0 : index
    %32 = vector.load %arg3[%c3_24, %c0_25] : memref<8x128xf32, #tpu.memory_space<vmem>>, vector<1x128xf32>
    %33 = vector.broadcast %32 : vector<1x128xf32> to vector<8x128xf32>
    %34 = arith.addf %31, %33 : vector<8x128xf32>
    %cst_26 = arith.constant 0.000000e+00 : f32
    %35 = vector.broadcast %cst_26 : f32 to vector<8x128xf32>
    %36 = arith.maximumf %34, %35 : vector<8x128xf32>
    %37 = arith.truncf %36 : vector<8x128xf32> to vector<8x128xbf16>
    %c4 = arith.constant 4 : index
    %c0_27 = arith.constant 0 : index
    %c0_28 = arith.constant 0 : index
    %38 = vector.load %arg2[%c4, %c0_27, %c0_28] : memref<6x128x128xbf16, #tpu.memory_space<vmem>>, vector<1x128x128xbf16>
    %39 = vector.shape_cast %38 : vector<1x128x128xbf16> to vector<128x128xbf16>
    %cst_29 = arith.constant dense<0.000000e+00> : vector<8x128xf32>
    %40 = tpu.matmul %37, %39, %cst_29 {dimension_numbers = #tpu.dot_dimension_numbers<[1], [0], [0], [1], [0, 0, 1, 1], [], []>} : vector<8x128xbf16>, vector<128x128xbf16>, vector<8x128xf32> -> vector<8x128xf32>
    %c4_30 = arith.constant 4 : index
    %c0_31 = arith.constant 0 : index
    %41 = vector.load %arg3[%c4_30, %c0_31] : memref<8x128xf32, #tpu.memory_space<vmem>>, vector<1x128xf32>
    %42 = vector.broadcast %41 : vector<1x128xf32> to vector<8x128xf32>
    %43 = arith.addf %40, %42 : vector<8x128xf32>
    %cst_32 = arith.constant 0.000000e+00 : f32
    %44 = vector.broadcast %cst_32 : f32 to vector<8x128xf32>
    %45 = arith.maximumf %43, %44 : vector<8x128xf32>
    %46 = arith.truncf %45 : vector<8x128xf32> to vector<8x128xbf16>
    %c5 = arith.constant 5 : index
    %c0_33 = arith.constant 0 : index
    %c0_34 = arith.constant 0 : index
    %47 = vector.load %arg2[%c5, %c0_33, %c0_34] : memref<6x128x128xbf16, #tpu.memory_space<vmem>>, vector<1x128x128xbf16>
    %48 = vector.shape_cast %47 : vector<1x128x128xbf16> to vector<128x128xbf16>
    %cst_35 = arith.constant dense<0.000000e+00> : vector<8x128xf32>
    %49 = tpu.matmul %46, %48, %cst_35 {dimension_numbers = #tpu.dot_dimension_numbers<[1], [0], [0], [1], [0, 0, 1, 1], [], []>} : vector<8x128xbf16>, vector<128x128xbf16>, vector<8x128xf32> -> vector<8x128xf32>
    %c5_36 = arith.constant 5 : index
    %c0_37 = arith.constant 0 : index
    %50 = vector.load %arg3[%c5_36, %c0_37] : memref<8x128xf32, #tpu.memory_space<vmem>>, vector<1x128xf32>
    %51 = vector.broadcast %50 : vector<1x128xf32> to vector<8x128xf32>
    %52 = arith.addf %49, %51 : vector<8x128xf32>
    %c0_38 = arith.constant 0 : index
    %c0_39 = arith.constant 0 : index
    %53 = vector.load %arg4[%c0_38, %c0_39] : memref<8x128xf32, #tpu.memory_space<vmem>>, vector<8x128xf32>
    tpu.vector_store %arg4[%c0_38, %c0_39], %52 {strides = array<i32>} : memref<8x128xf32, #tpu.memory_space<vmem>>, vector<8x128xf32>,
    return
  }
  func.func @transform_0(%arg0: i32) -> (i32, i32) {
    %c0_i32 = arith.constant 0 : i32
    %c0_i32_0 = arith.constant 0 : i32
    return %arg0, %c0_i32 : i32, i32
  }
  func.func @transform_1(%arg0: i32) -> (i32, i32, i32) {
    %c0_i32 = arith.constant 0 : i32
    %c0_i32_0 = arith.constant 0 : i32
    %c0_i32_1 = arith.constant 0 : i32
    %c0_i32_2 = arith.constant 0 : i32
    return %c0_i32, %c0_i32_0, %c0_i32_1 : i32, i32, i32
  }
  func.func @transform_2(%arg0: i32) -> (i32, i32) {
    %c0_i32 = arith.constant 0 : i32
    %c0_i32_0 = arith.constant 0 : i32
    %c0_i32_1 = arith.constant 0 : i32
    return %c0_i32, %c0_i32_0 : i32, i32
  }
  func.func @transform_3(%arg0: i32) -> (i32, i32) {
    %c0_i32 = arith.constant 0 : i32
    %c0_i32_0 = arith.constant 0 : i32
    return %arg0, %c0_i32 : i32, i32
  }
  func.func @transform_4(%arg0: i32) -> (i32, i32) {
    %c0_i32 = arith.constant 0 : i32
    %c0_i32_0 = arith.constant 0 : i32
    return %arg0, %c0_i32 : i32, i32
  }
}

</mosaic_0001>

<bundles_post_ra>
// kernel: tpu_custom_call.1
= control target key start
LH: loop header
LB: loop body
LE: loop exit
PB: predicated region body
PF: predicated region fallthrough
CT: control target
= control target key end

     0   :  { %10 = vsyncpa [#allocation3], 0  ;;  %s1931_s0 = inlined_call_operand.hbm [shape: bf16[16,128], index: 0, kind: input, shape index: {}]   ;;  %s1932_s1 = inlined_call_operand.hbm [shape: bf16[6,128,128], index: 1, kind: input, shape index: {}]   ;;  %s1933_s2 = inlined_call_operand.hbm [shape: f32[8,128], index: 2, kind: input, shape index: {}]   ;;  %s1934_s3 = inlined_call_operand.hbm [shape: f32[16,128], index: 3, kind: output, shape index: {0}]   ;;  %s1935_s4 = inlined_call_operand.hbm [shape: f32[16,128], index: 4, kind: output, shape index: {1}]  }
   0x1   :  { %12 = vsyncpa [#allocation3 + $0x1], 0 }
   0x2   :  { %13 = vsyncpa [#allocation6], 0 }
   0x3   :  { %14 = vsyncpa [#allocation4], 0 }
   0x4   :  { %16 = vsyncpa [#allocation4 + $0x1], 0 }
   0x5   :  { %17 = vsyncpa [#allocation10], 0 }
   0x6   :  { %19 = vsyncpa [#allocation10 + $0x1], 0  ;;  %s1662_s15 = smov 0   ;;  %s1664_s16 = smov 0  }
   0x7   :  { %s1666_s17 = smov 0   ;;  %s1668_s18 = smov 0  }
   0x8 LB: > { %s1683_s19 = sadd.s32 4294967295, %s1626_s18   ;;  %s1077_s20 = sadd.s32 4294967294, %s1626_s18   ;;  %s1626_s18 = sphi %s1668_s18, %s1957_s18   ;;  %s1622_s17 = sphi %s1666_s17, %s1956_s17   ;;  %s1618_s16 = sphi %s1664_s16, %s1955_s16   ;;  %s1614_s15 = sphi %s1662_s15, %s1954_s15  }
   0x9   : > { %p45_p0 = scmp.ne.s32.totalorder %s1618_s16, %s1614_s15  ;;  %p1936_p1 = scmp.eq.s32.totalorder %s1683_s19, 0 }
   0xa   : > { %p117_p3 = scmp.eq.s32.totalorder %s1077_s20, 1  ;;  %p1078_p5 = scmp.ge.s32.totalorder %s1626_s18, 1 }
   0xb   : > { %p1692_p4 = por %p1936_p1, %p45_p0  ;;  %p150_p7 = scmp.lt.s32.totalorder %s1626_s18, 3 }
   0xc   : > { %p1697_p6 = por %p117_p3, %p45_p0  ;;  %s1628_s24 = smov [#allocation5]  }
   0xd   : > { %s1940_s21 = scalar_select %p1692_p4, 1, 0 }
   0xe   : > { %s1941_s22 = scalar_select %p1697_p6, 1, 0 }
   0xf   : > { %p1702_p8 = pnand %p1078_p5, %p150_p7  ;;  %s162_s25 = sshll.u32 %s1628_s24, 4  ;;  %s163_s25 = int_to_ptr.vmem [resolvable:$true] %s162_s25 }
  0x10   : > { %s1629_s27 = smov [#allocation7]   ;;  %s1459_s29 = scalar_lea.vmem %s163_s25, 6144 }
  0x11   : > { %s1942_s23 = scalar_select %p1702_p8, 1, 0 }
  0x12   : > { %p1338_p9 = pneg %p1702_p8  ;;  %s176_s28 = sshll.u32 %s1629_s27, 4  ;;  %s177_s28 = int_to_ptr.vmem [resolvable:$true] %s176_s28 }
  0x13   : > { %p1460_p13 = scmp.ne.s32.totalorder %s163_s25, %s1459_s29  ;;  %p1467_p5 = scmp.lt.s32.totalorder %s163_s25, %s163_s25 }
  0x14   : > { %p1711_p11 = pnand %p1338_p9, %p1936_p1  ;;  %p1468_p7 = scmp.lt.s32.totalorder %s1459_s29, %s1459_s29 }
  0x16   : > { %p1450_p12 = pneg %p1711_p11  ;;  %p1469_p10 = por %p1468_p7, %p1467_p5 }
  0x18   : > { %p1462_p0 = pnand %p1460_p13, %p1450_p12 }
  0x1a   : > { %p1463_p3 = pneg %p1462_p0 }
  0x1c   : > { %p1470_p9 = pnand %p1469_p10, %p1463_p3 }
  0x1e   : > { %1473 = shalt.err (!%p1470_p9)
}
  0x1f   : > { %s1630_s30 = smov 64   ;;  %s1631_s5 = smov 4  }
  0x20   : > { %1341 = dma.hbm_to_vmem [thread:$0]  (!%p1711_p11), %s1932_s1, 6144, %s163_s25, [#allocation6], %s1630_s30, %s1630_s30, %s1631_s5  }
  0x21   : > { %s1485_s8 = scalar_lea.vmem %s177_s28, 128  ;;  %p1493_p2 = scmp.lt.s32.totalorder %s177_s28, %s177_s28 }
  0x22   : > { %p1486_p1 = scmp.ne.s32.totalorder %s177_s28, %s1485_s8  ;;  %p1494_p6 = scmp.lt.s32.totalorder %s1485_s8, %s1485_s8 }
  0x24   : > { %p1488_p13 = pnand %p1486_p1, %p1450_p12  ;;  %p1495_p5 = por %p1494_p6, %p1493_p2 }
  0x26   : > { %p1489_p0 = pneg %p1488_p13 }
  0x28   : > { %p1496_p10 = pnand %p1495_p5, %p1489_p0 }
  0x2a   : > { %1499 = shalt.err (!%p1496_p10)
}
  0x2b   : > { %1344 = dma.hbm_to_vmem [thread:$0]  (!%p1711_p11), %s1933_s2, 128, %s177_s28, [#allocation6]  }
  0x2c   : > { %s1734_s11 = sadd.s32 1, %s1626_s18   ;;  %s32_s12 = sadd.s32 1, %s1622_s17 }
  0x2d   : > { %s29_s13 = ssub.s32 %s1626_s18, %s1734_s11  ;;  %p39_p1 = scmp.ne.s32.totalorder %s1622_s17, %s1618_s16 }
  0x2e   : > { %p30_p2 = scmp.eq.s32.totalorder %s29_s13, 0  ;;  %p40_p6 = scmp.eq.s32.totalorder %s1626_s18, 0 }
  0x2f   : > { %p1944_p12 = scmp.eq.s32.totalorder %s1683_s19, 1  ;;  %p1358_p7 = scmp.lt.s32.totalorder %s1626_s18, 2 }
  0x30   : > { %s1750_s20 = scalar_select %p30_p2, %s1622_s17, %s32_s12  }
  0x31   : > { %p1744_p3 = por %p1944_p12, %p39_p1  ;;  %p41_p9 = por %p40_p6, %p39_p1 }
  0x32   : > { %s187_s24 = sand.u32 1, %s1622_s17   ;;  %s1083_s26 = sshll.u32 %s1626_s18, 6 }
  0x33   : > { %s1945_s14 = scalar_select %p1744_p3, 1, 0 }
  0x34   : > { %s1082_s25 = sshll.u32 %s187_s24, 2  ;;  %s1757_s29 = scalar_lea.hbm %s1931_s0, %s1083_s26 }
  0x35   : > { %s191_s30 = scalar_lea.vmem [#allocation2], %s1082_s25  ;;  %p1759_p11 = pnand %p1358_p7, %p41_p9 }
  0x36   : > { %s198_s5 = sshll.u32 %s191_s30, 4  ;;  %s188_s7 = scalar_lea.sflag [#allocation3], %s187_s24  ;;  %s199_s5 = int_to_ptr.vmem [resolvable:$true] %s198_s5 }
  0x37   : > { %s1500_s8 = scalar_lea.hbm %s1757_s29, 64  ;;  %p1502_p0 = pneg %p1759_p11 }
  0x38   : > { %p1501_p13 = scmp.ne.s32.totalorder %s1757_s29, %s1500_s8  ;;  %s1505_s12 = scalar_lea.hbm %s1931_s0, 128 }
  0x39   : > { %p1506_p1 = scmp.lt.s32.totalorder %s1757_s29, %s1931_s0  ;;  %p1507_p2 = scmp.lt.s32.totalorder %s1505_s12, %s1500_s8 }
  0x3a   : > { %p1503_p5 = pnand %p1502_p0, %p1501_p13 }
  0x3b   : > { %p1508_p6 = por %p1507_p2, %p1506_p1 }
  0x3c   : > { %p1504_p10 = pneg %p1503_p5 }
  0x3e   : > { %p1509_p12 = pnand %p1508_p6, %p1504_p10 }
  0x40   : > { %1512 = shalt.err (!%p1509_p12)
}
  0x41   : > { %s1513_s26 = scalar_lea.vmem %s199_s5, 64  ;;  %s1632_s24 = smov [#allocation2]  }
  0x42   : > { %p1514_p7 = scmp.ne.s32.totalorder %s199_s5, %s1513_s26  ;;  %s1518_s27 = sshll.u32 %s1632_s24, 4  ;;  %s1519_s27 = int_to_ptr.vmem [resolvable:$false] %s1518_s27 }
  0x43   : > { %s1520_s28 = scalar_lea.vmem %s1519_s27, 128  ;;  %p1521_p13 = scmp.lt.s32.totalorder %s199_s5, %s1519_s27 }
  0x44   : > { %p1516_p9 = pnand %p1514_p7, %p1502_p0  ;;  %p1522_p5 = scmp.lt.s32.totalorder %s1520_s28, %s1513_s26 }
  0x46   : > { %p1517_p3 = pneg %p1516_p9  ;;  %p1523_p4 = por %p1522_p5, %p1521_p13 }
  0x48   : > { %p1524_p8 = pnand %p1523_p4, %p1517_p3 }
  0x4a   : > { %1527 = shalt.err (!%p1524_p8)
}
  0x4b   : > { %1348 = dma.hbm_to_vmem [thread:$0]  (!%p1759_p11), %s1757_s29, 64, %s199_s5, %s188_s7  }
  0x4c   : > { %p1947_p10 = scmp.ne.s32.totalorder %s1942_s23, 0 }
  0x4d   : > { %s1780_s30 = sand.u32 (!%p1947_p10), 1, %s1618_s16   ;;  %p1948_p0 = scmp.ne.s32.totalorder (!%p1947_p10), %s1940_s21, 0 }
  0x4e   : > { %207 = sbr.rel (%p1947_p10) target bundleno = 1325 (0x52d), region = 32  ;;  %s1085_s8 = sshll.u32 (!%p1947_p10), %s1780_s30, 2 }
  0x4f   : > { %s210_s9 = scalar_lea.sflag (!%p1947_p10), [#allocation3], %s1780_s30  ;;  %s1784_s10 = scalar_lea.vmem (!%p1947_p10), [#allocation2], %s1085_s8 }
  0x53   : > { %1597 = dma.done.wait (%p1948_p0), %s210_s9, 64  }
  0x54   : > { %1599 = vsyncadd (%p1948_p0), %s210_s9, 4294967232  ;;  %p1949_p4 = scmp.eq.s32.totalorder %s1683_s19, 0 }
  0x56   : > { %1601 = dma.done.wait (%p1949_p4), [#allocation6], 6272   ;;  %p1950_p8 = pmov %p1949_p4 }
  0x57   : > { %v1633_v0 = vmov 0.0   ;;  %vm1634_vm0 = vmmov 0   ;;  %v1400_v1 = vld [vmem:[#allocation5 + $0x38] sm:$0xff]   ;;  %v1401_v2 = vld [vmem:[#allocation5 + $0x30] sm:$0xff]   ;;  %v1402_v3 = vld [vmem:[#allocation5 + $0x28] sm:$0xff]   ;;  %s1088_s21 = sshll.u32 %s1780_s30, 3 }
  0x58   : > { %1603 = vsyncadd (%p1950_p8), [#allocation6], 4294961024  ;;  %1204 = vmatprep.subr.bf16.mxu0 %v1633_v0  ;;  %1220 = vmatprep.mubr.msk.bf16.mxu0 %vm1634_vm0, %v1633_v0  ;;  %v1408_v4 = vld [vmem:[#allocation5 + $0x78] sm:$0xff]   ;;  %v1403_v5 = vld [vmem:[#allocation5 + $0x20] sm:$0xff]   ;;  %s1848_s23 = scalar_lea.vmem [#allocation9], %s1088_s21  ;;  %s1146_s29 = sshll.u32 %s1683_s19, 7 }
  0x59   : > { %1224 = vmatprep.subr.bf16.mxu1 %v1633_v0  ;;  %1240 = vmatprep.mubr.msk.bf16.mxu1 %vm1634_vm0, %v1633_v0  ;;  %v1409_v6 = vld [vmem:[#allocation5 + $0x70] sm:$0xff]   ;;  %v1404_v7 = vld [vmem:[#allocation5 + $0x18] sm:$0xff]   ;;  %v1410_v8 = vld [vmem:[#allocation5 + $0x68] sm:$0xff]   ;;  %s954_s7 = scalar_lea.hbm %s1935_s4, %s1146_s29  ;;  %s956_s12 = sshll.u32 %s1848_s23, 4  ;;  %s957_s12 = int_to_ptr.vmem [resolvable:$true] %s956_s12 }
  0x5a   : > { %1205 = vmatpush3.bf16.msra.mxu0 %v1400_v1  ;;  %1225 = vmatpush3.bf16.msra.mxu1 %v1408_v4  ;;  %v1405_v9 = vld [vmem:[#allocation5 + $0x10] sm:$0xff]   ;;  %v1411_v10 = vld [vmem:[#allocation5 + $0x60] sm:$0xff]   ;;  %v1406_v11 = vld [vmem:[#allocation5 + $0x8] sm:$0xff]   ;;  %s930_s13 = scalar_lea.sflag [#allocation10], %s1780_s30  ;;  %s1528_s25 = scalar_lea.vmem %s957_s12, 128 }
  0x5b   : > { %1206 = vmatprep.subr.bf16.mxu0 %v1633_v0  ;;  %1226 = vmatprep.subr.bf16.mxu1 %v1633_v0  ;;  %v1412_v12 = vld [vmem:[#allocation5 + $0x58] sm:$0xff]   ;;  %v1407_v13 = vld [vmem:[#allocation5] sm:$0xff]   ;;  %v1413_v14 = vld [vmem:[#allocation5 + $0x50] sm:$0xff]   ;;  %p1529_p3 = scmp.ne.s32.totalorder %s957_s12, %s1528_s25  ;;  %p1951_p11 = scmp.ne.s32.totalorder %s1945_s14, 0 }
  0x5c   : > { %v252_v15 = vld [vmem:[%s1784_s10] sm:$0xf]  ;;  %v1414_v16 = vld [vmem:[#allocation5 + $0x48] sm:$0xff]   ;;  %v1415_v17 = vld [vmem:[#allocation5 + $0x40] sm:$0xff]   ;;  %s1635_s26 = smov [#allocation9]  }
  0x5d   : > { %v1416_v18 = vld [vmem:[#allocation5 + $0xb8] sm:$0xff]   ;;  %v1417_v19 = vld [vmem:[#allocation5 + $0xb0] sm:$0xff]   ;;  %v1418_v20 = vld [vmem:[#allocation5 + $0xa8] sm:$0xff]   ;;  %p1530_p1 = pnand %p1529_p3, %p1951_p11  ;;  %s1532_s24 = sshll.u32 %s1635_s26, 4  ;;  %s1533_s24 = int_to_ptr.vmem [resolvable:$false] %s1532_s24 }
  0x5e   : > { %1207 = vmatpush3.bf16.msra.mxu0 %v1401_v2  ;;  %1227 = vmatpush3.bf16.msra.mxu1 %v1409_v6  ;;  %v1419_v21 = vld [vmem:[#allocation5 + $0xa0] sm:$0xff]   ;;  %v1420_v22 = vld [vmem:[#allocation5 + $0x98] sm:$0xff]   ;;  %v1421_v23 = vld [vmem:[#allocation5 + $0x90] sm:$0xff]   ;;  %s1534_s27 = scalar_lea.vmem %s1533_s24, 256  ;;  %p1535_p6 = scmp.lt.s32.totalorder %s957_s12, %s1533_s24 }
  0x5f   : > { %1208 = vmatprep.subr.bf16.mxu0 %v1633_v0  ;;  %1228 = vmatprep.subr.bf16.mxu1 %v1633_v0  ;;  %v1090_v24 = vld [vmem:[#allocation7] ss:$0 sm:$0xff]  ;;  %v1422_v32 = vld [vmem:[#allocation5 + $0x88] sm:$0xff]   ;;  %v1424_v34 = vld [vmem:[#allocation5 + $0xf8] sm:$0xff]   ;;  %p1531_p2 = pneg %p1530_p1  ;;  %p1536_p12 = scmp.lt.s32.totalorder %s1534_s27, %s1528_s25 }
  0x60   : > { %v1423_v33 = vld [vmem:[#allocation5 + $0x80] sm:$0xff]   ;;  %v1425_v35 = vld [vmem:[#allocation5 + $0xf0] sm:$0xff]   ;;  %v1426_v36 = vld [vmem:[#allocation5 + $0xe8] sm:$0xff]  }
  0x61   : > { %v1427_v37 = vld [vmem:[#allocation5 + $0xe0] sm:$0xff]   ;;  %v1428_v38 = vld [vmem:[#allocation5 + $0xd8] sm:$0xff]   ;;  %v1429_v39 = vld [vmem:[#allocation5 + $0xd0] sm:$0xff]   ;;  %p1537_p7 = por %p1536_p12, %p1535_p6 }
  0x62   : > { %1209 = vmatpush3.bf16.msra.mxu0 %v1402_v3  ;;  %1229 = vmatpush3.bf16.msra.mxu1 %v1410_v8  ;;  %v1099_v40 = vld [vmem:[#allocation7 + $0x1] ss:$0 sm:$0xff]  ;;  %v1430_v48 = vld [vmem:[#allocation5 + $0xc8] sm:$0xff]   ;;  %v1432_v50 = vld [vmem:[#allocation5 + $0x138] sm:$0xff]  }
  0x63   : > { %1210 = vmatprep.subr.bf16.mxu0 %v1633_v0  ;;  %1230 = vmatprep.subr.bf16.mxu1 %v1633_v0  ;;  %v1431_v49 = vld [vmem:[#allocation5 + $0xc0] sm:$0xff]   ;;  %v1433_v51 = vld [vmem:[#allocation5 + $0x130] sm:$0xff]   ;;  %v1434_v52 = vld [vmem:[#allocation5 + $0x128] sm:$0xff]   ;;  %p1538_p9 = pnand %p1537_p7, %p1531_p2 }
  0x64   : > { %v1435_v53 = vld [vmem:[#allocation5 + $0x120] sm:$0xff]   ;;  %v1436_v54 = vld [vmem:[#allocation5 + $0x118] sm:$0xff]   ;;  %v1437_v55 = vld [vmem:[#allocation5 + $0x110] sm:$0xff]  }
  0x65   : > { %v1108_v56 = vld [vmem:[#allocation7 + $0x2] ss:$0 sm:$0xff]  ;;  %v1438_v1 = vld [vmem:[#allocation5 + $0x108] sm:$0xff]   ;;  %v1440_v3 = vld [vmem:[#allocation5 + $0x178] sm:$0xff]  }
  0x66   : > { %1211 = vmatpush3.bf16.msra.mxu0 %v1403_v5  ;;  %1231 = vmatpush3.bf16.msra.mxu1 %v1411_v10  ;;  %v1439_v2 = vld [vmem:[#allocation5 + $0x100] sm:$0xff]   ;;  %v1441_v4 = vld [vmem:[#allocation5 + $0x170] sm:$0xff]   ;;  %v1442_v5 = vld [vmem:[#allocation5 + $0x168] sm:$0xff]  }
  0x67   : > { %1212 = vmatprep.subr.bf16.mxu0 %v1633_v0  ;;  %1232 = vmatprep.subr.bf16.mxu1 %v1633_v0  ;;  %v1443_v6 = vld [vmem:[#allocation5 + $0x160] sm:$0xff]   ;;  %v1445_v8 = vld [vmem:[#allocation5 + $0x150] sm:$0xff]  }
  0x6a   : > { %1213 = vmatpush3.bf16.msra.mxu0 %v1404_v7  ;;  %1233 = vmatpush3.bf16.msra.mxu1 %v1412_v12  ;;  %v1444_v7 = vld [vmem:[#allocation5 + $0x158] sm:$0xff]  }
  0x6b   : > { %1214 = vmatprep.subr.bf16.mxu0 %v1633_v0  ;;  %1234 = vmatprep.subr.bf16.mxu1 %v1633_v0 }
  0x6e   : > { %1215 = vmatpush3.bf16.msra.mxu0 %v1405_v9  ;;  %1235 = vmatpush3.bf16.msra.mxu1 %v1413_v14  ;;  %v1117_v9 = vld [vmem:[#allocation7 + $0x3] ss:$0 sm:$0xff] }
  0x6f   : > { %1216 = vmatprep.subr.bf16.mxu0 %v1633_v0  ;;  %1236 = vmatprep.subr.bf16.mxu1 %v1633_v0 }
  0x72   : > { %1217 = vmatpush3.bf16.msra.mxu0 %v1406_v11  ;;  %1237 = vmatpush3.bf16.msra.mxu1 %v1414_v16 }
  0x73   : > { %1218 = vmatprep.subr.bf16.mxu0 %v1633_v0  ;;  %1238 = vmatprep.subr.bf16.mxu1 %v1633_v0 }
  0x76   : > { %1219 = vmatpush3.bf16.msra.mxu0 %v1407_v13  ;;  %1239 = vmatpush3.bf16.msra.mxu1 %v1415_v17  ;;  %v1446_v17 = vld [vmem:[#allocation5 + $0x148] sm:$0xff]  }
  0x77   : > { %1244 = vmatprep.subr.bf16.mxu0 %v1633_v0  ;;  %1264 = vmatprep.subr.bf16.mxu1 %v1633_v0 }
  0x79   : > { %1221 = vmatmul.mubr.bf16.vlgmr.msra.gmra.mxu0 %v252_v15 }
  0x7a   : > { %1260 = vmatprep.mubr.msk.bf16.mxu0 %vm1634_vm0, %v1633_v0  ;;  %1245 = vmatpush3.bf16.msra.mxu0 %v1416_v18  ;;  %v1447_v18 = vld [vmem:[#allocation5 + $0x140] sm:$0xff]  }
  0x7b   : > { %1246 = vmatprep.subr.bf16.mxu0 %v1633_v0 }
  0x7e   : > { %1247 = vmatpush3.bf16.msra.mxu0 %v1417_v19  ;;  %v1126_v19 = vld [vmem:[#allocation7 + $0x4] ss:$0 sm:$0xff] }
  0x7f   : > { %1248 = vmatprep.subr.bf16.mxu0 %v1633_v0 }
  0x82   : > { %1249 = vmatpush3.bf16.msra.mxu0 %v1418_v20 }
  0x83   : > { %1250 = vmatprep.subr.bf16.mxu0 %v1633_v0 }
  0x86   : > { %1251 = vmatpush3.bf16.msra.mxu0 %v1419_v21 }
  0x87   : > { %1252 = vmatprep.subr.bf16.mxu0 %v1633_v0 }
  0x8a   : > { %1253 = vmatpush3.bf16.msra.mxu0 %v1420_v22 }
  0x8b   : > { %1254 = vmatprep.subr.bf16.mxu0 %v1633_v0 }
  0x8e   : > { %1255 = vmatpush3.bf16.msra.mxu0 %v1421_v23 }
  0x8f   : > { %1256 = vmatprep.subr.bf16.mxu0 %v1633_v0 }
  0x92   : > { %1257 = vmatpush3.bf16.msra.mxu0 %v1422_v32 }
  0x93   : > { %1258 = vmatprep.subr.bf16.mxu0 %v1633_v0 }
  0x96   : > { %1259 = vmatpush3.bf16.msra.mxu0 %v1423_v33 }
  0x97   : > { %1284 = vmatprep.subr.bf16.mxu0 %v1633_v0 }
 0x139   : > { %v356_v25 = vpop.f32.mrf.mxu0 }
 0x13a   : > { %v357_v26 = vadd.f32 %v1090_v24, %v356_v25 }
 0x13b   : > { %v1222_v27 = vpop.f32.mrf.mxu0 }
 0x13c   : > { %v362_v28 = vmax.f32 %v357_v26, 0.0 }
 0x13d   : > { %v359_v29 = vpop.f32.mrf.mxu0 }
 0x13e   : > { %v363_v30 = vpack.c.bf16 %v362_v28, %v362_v28 }
 0x13f   : > { %v1223_v31 = vpop.f32.mrf.mxu0 }
 0x140   : > { %1241 = vmatmul.mubr.bf16.vlgmr.msra.gmra.mxu1 %v363_v30 }
 0x141   : > { %1280 = vmatprep.mubr.msk.bf16.mxu1 %vm1634_vm0, %v1633_v0  ;;  %1265 = vmatpush3.bf16.msra.mxu1 %v1424_v34 }
 0x142   : > { %1266 = vmatprep.subr.bf16.mxu1 %v1633_v0 }
 0x145   : > { %1267 = vmatpush3.bf16.msra.mxu1 %v1425_v35 }
 0x146   : > { %1268 = vmatprep.subr.bf16.mxu1 %v1633_v0 }
 0x149   : > { %1269 = vmatpush3.bf16.msra.mxu1 %v1426_v36 }
 0x14a   : > { %1270 = vmatprep.subr.bf16.mxu1 %v1633_v0 }
 0x14d   : > { %1271 = vmatpush3.bf16.msra.mxu1 %v1427_v37 }
 0x14e   : > { %1272 = vmatprep.subr.bf16.mxu1 %v1633_v0 }
 0x151   : > { %1273 = vmatpush3.bf16.msra.mxu1 %v1428_v38 }
 0x152   : > { %1274 = vmatprep.subr.bf16.mxu1 %v1633_v0 }
 0x155   : > { %1275 = vmatpush3.bf16.msra.mxu1 %v1429_v39 }
 0x156   : > { %1276 = vmatprep.subr.bf16.mxu1 %v1633_v0 }
 0x159   : > { %1277 = vmatpush3.bf16.msra.mxu1 %v1430_v48 }
 0x15a   : > { %1278 = vmatprep.subr.bf16.mxu1 %v1633_v0 }
 0x15d   : > { %1279 = vmatpush3.bf16.msra.mxu1 %v1431_v49 }
 0x15e   : > { %1304 = vmatprep.subr.bf16.mxu1 %v1633_v0 }
 0x200   : > { %v468_v41 = vpop.f32.mrf.mxu1 }
 0x201   : > { %v469_v42 = vadd.f32 %v1099_v40, %v468_v41 }
 0x202   : > { %v1242_v43 = vpop.f32.mrf.mxu1 }
 0x203   : > { %v474_v44 = vmax.f32 %v469_v42, 0.0 }
 0x204   : > { %v471_v45 = vpop.f32.mrf.mxu1 }
 0x205   : > { %v475_v46 = vpack.c.bf16 %v474_v44, %v474_v44 }
 0x206   : > { %v1243_v47 = vpop.f32.mrf.mxu1 }
 0x207   : > { %1261 = vmatmul.mubr.bf16.vlgmr.msra.gmra.mxu0 %v475_v46 }
 0x208   : > { %1300 = vmatprep.mubr.msk.bf16.mxu0 %vm1634_vm0, %v1633_v0  ;;  %1285 = vmatpush3.bf16.msra.mxu0 %v1432_v50 }
 0x209   : > { %1286 = vmatprep.subr.bf16.mxu0 %v1633_v0 }
 0x20c   : > { %1287 = vmatpush3.bf16.msra.mxu0 %v1433_v51 }
 0x20d   : > { %1288 = vmatprep.subr.bf16.mxu0 %v1633_v0 }
 0x210   : > { %1289 = vmatpush3.bf16.msra.mxu0 %v1434_v52 }
 0x211   : > { %1290 = vmatprep.subr.bf16.mxu0 %v1633_v0 }
 0x214   : > { %1291 = vmatpush3.bf16.msra.mxu0 %v1435_v53 }
 0x215   : > { %1292 = vmatprep.subr.bf16.mxu0 %v1633_v0 }
 0x218   : > { %1293 = vmatpush3.bf16.msra.mxu0 %v1436_v54 }
 0x219   : > { %1294 = vmatprep.subr.bf16.mxu0 %v1633_v0 }
 0x21c   : > { %1295 = vmatpush3.bf16.msra.mxu0 %v1437_v55 }
 0x21d   : > { %1296 = vmatprep.subr.bf16.mxu0 %v1633_v0 }
 0x220   : > { %1297 = vmatpush3.bf16.msra.mxu0 %v1438_v1 }
 0x221   : > { %1298 = vmatprep.subr.bf16.mxu0 %v1633_v0 }
 0x224   : > { %1299 = vmatpush3.bf16.msra.mxu0 %v1439_v2 }
 0x2c7   : > { %v580_v57 = vpop.f32.mrf.mxu0 }
 0x2c8   : > { %v581_v58 = vadd.f32 %v1108_v56, %v580_v57 }
 0x2c9   : > { %v1262_v59 = vpop.f32.mrf.mxu0 }
 0x2ca   : > { %v586_v60 = vmax.f32 %v581_v58, 0.0 }
 0x2cb   : > { %v583_v61 = vpop.f32.mrf.mxu0 }
 0x2cc   : > { %587 = vst [vmem:[%s1848_s23] sm:$0xff] %v586_v60  ;;  %v588_v62 = vpack.c.bf16 %v586_v60, %v586_v60 }
 0x2cd   : > { %v1263_v63 = vpop.f32.mrf.mxu0 }
 0x2ce   : > { %1281 = vmatmul.mubr.bf16.vlgmr.msra.gmra.mxu1 %v588_v62 }
 0x2cf   : > { %1320 = vmatprep.mubr.msk.bf16.mxu1 %vm1634_vm0, %v1633_v0  ;;  %1305 = vmatpush3.bf16.msra.mxu1 %v1440_v3 }
 0x2d0   : > { %1306 = vmatprep.subr.bf16.mxu1 %v1633_v0 }
 0x2d3   : > { %1307 = vmatpush3.bf16.msra.mxu1 %v1441_v4 }
 0x2d4   : > { %1308 = vmatprep.subr.bf16.mxu1 %v1633_v0 }
 0x2d7   : > { %1309 = vmatpush3.bf16.msra.mxu1 %v1442_v5 }
 0x2d8   : > { %1310 = vmatprep.subr.bf16.mxu1 %v1633_v0 }
 0x2db   : > { %1311 = vmatpush3.bf16.msra.mxu1 %v1443_v6 }
 0x2dc   : > { %1312 = vmatprep.subr.bf16.mxu1 %v1633_v0 }
 0x2df   : > { %1313 = vmatpush3.bf16.msra.mxu1 %v1444_v7 }
 0x2e0   : > { %1314 = vmatprep.subr.bf16.mxu1 %v1633_v0 }
 0x2e3   : > { %1315 = vmatpush3.bf16.msra.mxu1 %v1445_v8 }
 0x2e4   : > { %1316 = vmatprep.subr.bf16.mxu1 %v1633_v0 }
 0x2e7   : > { %1317 = vmatpush3.bf16.msra.mxu1 %v1446_v17 }
 0x2e8   : > { %1318 = vmatprep.subr.bf16.mxu1 %v1633_v0 }
 0x2eb   : > { %1319 = vmatpush3.bf16.msra.mxu1 %v1447_v18 }
 0x38e   : > { %v693_v10 = vpop.f32.mrf.mxu1 }
 0x38f   : > { %v694_v11 = vadd.f32 %v1117_v9, %v693_v10 }
 0x390   : > { %v1282_v12 = vpop.f32.mrf.mxu1 }
 0x391   : > { %v699_v13 = vmax.f32 %v694_v11, 0.0 }
 0x392   : > { %v696_v14 = vpop.f32.mrf.mxu1 }
 0x393   : > { %v700_v15 = vpack.c.bf16 %v699_v13, %v699_v13 }
 0x394   : > { %v1283_v16 = vpop.f32.mrf.mxu1 }
 0x395   : > { %1301 = vmatmul.mubr.bf16.vlgmr.msra.gmra.mxu0 %v700_v15 }
 0x455   : > { %v805_v20 = vpop.f32.mrf.mxu0 }
 0x456   : > { %v806_v21 = vadd.f32 %v1126_v19, %v805_v20 }
 0x457   : > { %v1302_v22 = vpop.f32.mrf.mxu0 }
 0x458   : > { %v811_v23 = vmax.f32 %v806_v21, 0.0 }
 0x459   : > { %v808_v24 = vpop.f32.mrf.mxu0 }
 0x45a   : > { %v812_v25 = vpack.c.bf16 %v811_v23, %v811_v23 }
 0x45b   : > { %v1303_v26 = vpop.f32.mrf.mxu0 }
 0x45c   : > { %1321 = vmatmul.mubr.bf16.vlgmr.msra.gmra.mxu1 %v812_v25 }
 0x45d   : > { %1541 = shalt.err (!%p1538_p9)
}
 0x45e   : > { %s1542_s28 = scalar_lea.hbm %s954_s7, 128  ;;  %s1546_s10 = scalar_lea.hbm %s1935_s4, 256 }
 0x45f   : > { %p1543_p13 = scmp.ne.s32.totalorder %s954_s7, %s1542_s28  ;;  %p1547_p0 = scmp.lt.s32.totalorder %s954_s7, %s1935_s4 }
 0x460   : > { %p1548_p4 = scmp.lt.s32.totalorder %s1546_s10, %s1542_s28 }
 0x461   : > { %p1544_p5 = pnand %p1543_p13, %p1951_p11 }
 0x462   : > { %p1549_p8 = por %p1548_p4, %p1547_p0 }
 0x463   : > { %p1545_p10 = pneg %p1544_p5 }
 0x465   : > { %p1550_p3 = pnand %p1549_p8, %p1545_p10 }
 0x467   : > { %1553 = shalt.err (!%p1550_p3)
}
 0x468   : > { %1335 = dma.vmem_to_hbm [thread:$0]  (%p1951_p11), %s957_s12, 128, %s954_s7, %s930_s13   ;;  %v1135_v0 = vld [vmem:[#allocation7 + $0x5] ss:$0 sm:$0xff] }
 0x469   : > { %s243_s6 = scalar_lea.vmem [#allocation8], %s1088_s21  ;;  %s1888_s27 = scalar_lea.hbm %s1934_s3, %s1146_s29 }
 0x46a   : > { %s943_s25 = sshll.u32 %s243_s6, 4  ;;  %s925_s7 = scalar_lea.sflag [#allocation4], %s1780_s30  ;;  %s1890_s25 = int_to_ptr.vmem [resolvable:$true] %s943_s25 }
 0x46b   : > { %s1554_s12 = scalar_lea.vmem %s1890_s25, 128  ;;  %s1636_s19 = smov [#allocation8]  }
 0x46c   : > { %p1555_p1 = scmp.ne.s32.totalorder %s1890_s25, %s1554_s12  ;;  %s1558_s21 = sshll.u32 %s1636_s19, 4  ;;  %s1559_s21 = int_to_ptr.vmem [resolvable:$false] %s1558_s21 }
 0x46d   : > { %s1560_s13 = scalar_lea.vmem %s1559_s21, 256  ;;  %p1561_p12 = scmp.lt.s32.totalorder %s1890_s25, %s1559_s21 }
 0x46e   : > { %p1556_p2 = pnand %p1555_p1, %p1951_p11  ;;  %p1562_p7 = scmp.lt.s32.totalorder %s1560_s13, %s1554_s12 }
 0x470   : > { %p1557_p6 = pneg %p1556_p2  ;;  %p1563_p9 = por %p1562_p7, %p1561_p12 }
 0x472   : > { %p1564_p13 = pnand %p1563_p9, %p1557_p6 }
 0x51c   : > { %v917_v27 = vpop.f32.mrf.mxu1 }
 0x51d   : > { %v918_v28 = vadd.f32 %v1135_v0, %v917_v27 }
 0x51e   : > { %v1322_v29 = vpop.f32.mrf.mxu1 }
 0x51f   : > { %923 = vst [vmem:[%s243_s6] sm:$0xff] %v918_v28 }
 0x520   : > { %v920_v30 = vpop.f32.mrf.mxu1 }
 0x521   : > { %1567 = shalt.err (!%p1564_p13)
}
 0x522   : > { %s1568_s29 = scalar_lea.hbm %s1888_s27, 128  ;;  %s1572_s8 = scalar_lea.hbm %s1934_s3, 256 }
 0x523   : > { %p1569_p5 = scmp.ne.s32.totalorder %s1888_s27, %s1568_s29  ;;  %p1573_p4 = scmp.lt.s32.totalorder %s1888_s27, %s1934_s3 }
 0x524   : > { %p1574_p8 = scmp.lt.s32.totalorder %s1572_s8, %s1568_s29 }
 0x525   : > { %p1570_p10 = pnand %p1569_p5, %p1951_p11 }
 0x526   : > { %p1575_p3 = por %p1574_p8, %p1573_p4 }
 0x527   : > { %p1571_p0 = pneg %p1570_p10 }
 0x529   : > { %p1576_p1 = pnand %p1575_p3, %p1571_p0 }
 0x52b   : > { %1579 = shalt.err (!%p1576_p1)
}
 0x52c   : > { %1334 = dma.vmem_to_hbm [thread:$0]  (%p1951_p11), %s1890_s25, 128, %s1888_s27, %s925_s7   ;;  %v1323_v31 = vpop.f32.mrf.mxu1 }
 0x52d PF: > { %s968_s23 = sand.u32 1, %s1614_s15   ;;  %p1952_p2 = scmp.ne.s32.totalorder %s1941_s22, 0 }
 0x52e   : > { %p1953_p6 = scmp.ge.s32.totalorder %s1626_s18, 2  ;;  %s969_s5 = scalar_lea.sflag [#allocation4], %s968_s23 }
 0x530   : > { %p1350_p12 = pnand %p1953_p6, %p1952_p2 }
 0x532   : > { %p1351_p7 = pneg %p1350_p12 }
 0x534   : > { %1605 = dma.done.wait (%p1351_p7), %s969_s5, 128  }
 0x535   : > { %1607 = vsyncadd (%p1351_p7), %s969_s5, 4294967168  ;;  %s978_s6 = scalar_lea.sflag [#allocation10], %s968_s23 }
 0x536   : > { %1609 = dma.done.wait (%p1351_p7), %s978_s6, 128  }
 0x537   : > { %1611 = vsyncadd (%p1351_p7), %s978_s6, 4294967168  ;;  %p22_p11 = scmp.ge.s32.totalorder %s1734_s11, 4   ;;  %s1954_s15 = smov %s1618_s16 }
 0x538   : > { %s1955_s16 = smov %s1622_s17  ;;  %s1956_s17 = smov %s1750_s20 }
 0x539   : > { %s1957_s18 = smov %s1734_s11  ;;  %24 = sbr.rel (!%p22_p11) target bundleno = 8 (0x8), region = 107 }
 0x53e   :  { %983 = vsyncpa [#allocation3], 1 }
 0x53f   :  { %985 = vsyncpa [#allocation3 + $0x1], 1 }
 0x540   :  { %986 = vsyncpa [#allocation6], 1 }
 0x541   :  { %987 = vsyncpa [#allocation4], 1 }
 0x542   :  { %989 = vsyncpa [#allocation4 + $0x1], 1 }
 0x543   :  { %990 = vsyncpa [#allocation10], 1 }
 0x544   :  { %992 = vsyncpa [#allocation10 + $0x1], 1 }

</bundles_post_ra>
